<compile_context>
chip_gen: v6e
topology: v6e:2x2x1
jax: 0.10.0
libtpu: 0.0.40
codegen_flags: <defaults>
</compile_context>

<pallas_src>
import jax
import jax.numpy as jnp
from jax.experimental import pallas as pl
from jax.experimental.pallas import tpu as pltpu


# ---------------------------------------------------------------------------
# Fused MLP kernel: 4 Linear layers + LeakyReLU(0.1)
# ---------------------------------------------------------------------------
def _disc2_kernel(x_ref,
                  w0_ref, b0_ref,
                  w1_ref, b1_ref,
                  w2_ref, b2_ref,
                  w3_ref, b3_ref,
                  o_ref):
    slope = jnp.float32(0.1)

    def lrelu(x):
        return jnp.maximum(x, slope * x)

    # Layer 0: (TM, 64) @ (64, 512)   -- bf16 MXU, f32 accumulate
    h = jnp.dot(x_ref[...].astype(jnp.bfloat16), w0_ref[...],
                preferred_element_type=jnp.float32)
    h = lrelu(h + b0_ref[...])                                    # (TM, 512) f32

    # Layer 1: 512 -> 512
    h = jnp.dot(h.astype(jnp.bfloat16), w1_ref[...],
                preferred_element_type=jnp.float32)
    h = lrelu(h + b1_ref[...])                                    # (TM, 512) f32

    # Layer 2: 512 -> 256
    h = jnp.dot(h.astype(jnp.bfloat16), w2_ref[...],
                preferred_element_type=jnp.float32)
    h = lrelu(h + b2_ref[...])                                    # (TM, 256) f32

    # Layer 3: 256 -> 1 as VPU dot-product + lane reduction (f32, off the MXU)
    out = jnp.sum(h * w3_ref[...], axis=-1, keepdims=True) + b3_ref[...]   # (TM, 1)
    o_ref[...] = out.astype(o_ref.dtype)


# ---------------------------------------------------------------------------
# Wrapper: concat in XLA, batch-tiled pallas_call with weight-resident blocks
# ---------------------------------------------------------------------------
def discriminator2_forward(params, vt, vtnext, tm=512):
    """vt, vtnext: (B, v_size) -> (B, 1) f32."""
    B = vt.shape[0]
    x = jnp.concatenate([vt.astype(jnp.float32), vtnext.astype(jnp.float32)],
                        axis=1)                                    # (B, 2*v_size)
    K = x.shape[1]

    # Batch tiling: small B runs as a single full-batch tile, large B is padded
    # up to a multiple of TM so each block is (TM, K) with TM % 8 == 0.
    if B <= tm:
        tm_eff, Bp = B, B
    else:
        tm_eff = tm
        Bp = pl.cdiv(B, tm) * tm
        if Bp != B:
            x = jnp.pad(x, ((0, Bp - B), (0, 0)))
    grid = (Bp // tm_eff,)

    w0, b0 = params["w0"], params["b0"]
    w1, b1 = params["w1"], params["b1"]
    w2, b2 = params["w2"], params["b2"]
    w3t, b3 = params["w3t"], params["b3"]

    in_specs = [
        pl.BlockSpec((tm_eff, K), lambda i: (i, 0)),        # x: tiled over batch
        pl.BlockSpec(w0.shape, lambda i: (0, 0)),           # weights/biases stay
        pl.BlockSpec(b0.shape, lambda i: (0, 0)),           # resident across the
        pl.BlockSpec(w1.shape, lambda i: (0, 0)),           # whole grid
        pl.BlockSpec(b1.shape, lambda i: (0, 0)),
        pl.BlockSpec(w2.shape, lambda i: (0, 0)),
        pl.BlockSpec(b2.shape, lambda i: (0, 0)),
        pl.BlockSpec(w3t.shape, lambda i: (0, 0)),
        pl.BlockSpec(b3.shape, lambda i: (0, 0)),
    ]

    weight_bytes = (w0.size * 2 + w1.size * 2 + w2.size * 2          # bf16
                    + (b0.size + b1.size + b2.size + w3t.size + b3.size) * 4)
    flops = 2 * Bp * (K * 512 + 512 * 512 + 512 * 256 + 256)
    cost = pl.CostEstimate(flops=flops, transcendentals=0,
                           bytes_accessed=weight_bytes + Bp * (K * 4 + 4))

    out = pl.pallas_call(
        _disc2_kernel,
        out_shape=jax.ShapeDtypeStruct((Bp, 1), jnp.float32),
        grid=grid,
        in_specs=in_specs,
        out_specs=pl.BlockSpec((tm_eff, 1), lambda i: (i, 0)),
        compiler_params=pltpu.CompilerParams(
            dimension_semantics=("parallel",)),
        cost_estimate=cost,
    )(x, w0, b0, w1, b1, w2, b2, w3t, b3)
    return out[:B]


# ---------------------------------------------------------------------------
# Plain-JAX reference (f32 compute on the same bf16-stored weights)
# ---------------------------------------------------------------------------
def discriminator2_reference(params, vt, vtnext):
    def lrelu(x):
        return jnp.maximum(x, 0.1 * x)
    x = jnp.concatenate([vt, vtnext], axis=1).astype(jnp.float32)
    x = lrelu(x @ params["w0"].astype(jnp.float32) + params["b0"])
    x = lrelu(x @ params["w1"].astype(jnp.float32) + params["b1"])
    x = lrelu(x @ params["w2"].astype(jnp.float32) + params["b2"])
    return x @ params["w3t"].T + params["b3"]


# ---------------------------------------------------------------------------
# Deterministic synthetic parameters.
#   Matmul weights: bf16, stored (in, out).  Biases + final row vector: f32.
# ---------------------------------------------------------------------------
def init_params(key, v_size=32):
    keys = iter(jax.random.split(key, 16))

    def nrm(shape, scale=0.05, dtype=jnp.float32):
        return (scale * jax.random.normal(next(keys), shape,
                                          dtype=jnp.float32)).astype(dtype)

    return {
        "w0":  nrm((2 * v_size, 512), dtype=jnp.bfloat16),
        "b0":  nrm((1, 512)),
        "w1":  nrm((512, 512), dtype=jnp.bfloat16),
        "b1":  nrm((1, 512)),
        "w2":  nrm((512, 256), dtype=jnp.bfloat16),
        "b2":  nrm((1, 256)),
        "w3t": nrm((1, 256)),            # final Linear(256,1) weight as an f32 row
        "b3":  nrm((1, 1)),
    }


# ---------------------------------------------------------------------------
if __name__ == "__main__":
    B, v_size = 2, 32

    key = jax.random.PRNGKey(0)
    k_p, k_v, k_n = jax.random.split(key, 3)

    params = init_params(k_p, v_size)
    vt = jax.random.normal(k_v, (B, v_size), dtype=jnp.float32)
    vtnext = jax.random.normal(k_n, (B, v_size), dtype=jnp.float32)

    out = jax.jit(discriminator2_forward)(params, vt, vtnext)
    out = jax.block_until_ready(out)
    assert out.shape == (B, 1), out.shape

    ref = discriminator2_reference(params, vt, vtnext)
    assert jnp.allclose(out, ref, rtol=2e-2, atol=2e-2), (out, ref)

    print("KERNEL_OK")
</pallas_src>

<mosaic_0001>
module attributes {stable_mosaic.version = 11 : i64} {
  func.func @_disc2_kernel(%arg0: i32, %arg1: memref<2x64xf32, #tpu.memory_space<vmem>>, %arg2: memref<64x512xbf16, #tpu.memory_space<vmem>>, %arg3: memref<1x512xf32, #tpu.memory_space<vmem>>, %arg4: memref<512x512xbf16, #tpu.memory_space<vmem>>, %arg5: memref<1x512xf32, #tpu.memory_space<vmem>>, %arg6: memref<512x256xbf16, #tpu.memory_space<vmem>>, %arg7: memref<1x256xf32, #tpu.memory_space<vmem>>, %arg8: memref<1x256xf32, #tpu.memory_space<vmem>>, %arg9: memref<1x1xf32, #tpu.memory_space<vmem>>, %arg10: memref<2x1xf32, #tpu.memory_space<vmem>>) attributes {dimension_semantics = [#tpu.dimension_semantics<parallel>], iteration_bounds = array<i64: 1>, scalar_prefetch = 0 : i64, scratch_operands = 0 : i64, tpu.core_type = #tpu.core_type<tc>, window_params = [{transform_indices = @transform_0, window_bounds = array<i64: 2, 64>}, {pipeline_mode = #tpu.pipeline_mode<synchronous>, transform_indices = @transform_1, window_bounds = array<i64: 64, 512>}, {pipeline_mode = #tpu.pipeline_mode<synchronous>, transform_indices = @transform_2, window_bounds = array<i64: 1, 512>}, {pipeline_mode = #tpu.pipeline_mode<synchronous>, transform_indices = @transform_3, window_bounds = array<i64: 512, 512>}, {pipeline_mode = #tpu.pipeline_mode<synchronous>, transform_indices = @transform_4, window_bounds = array<i64: 1, 512>}, {pipeline_mode = #tpu.pipeline_mode<synchronous>, transform_indices = @transform_5, window_bounds = array<i64: 512, 256>}, {pipeline_mode = #tpu.pipeline_mode<synchronous>, transform_indices = @transform_6, window_bounds = array<i64: 1, 256>}, {pipeline_mode = #tpu.pipeline_mode<synchronous>, transform_indices = @transform_7, window_bounds = array<i64: 1, 256>}, {pipeline_mode = #tpu.pipeline_mode<synchronous>, transform_indices = @transform_8, window_bounds = array<i64: 1, 1>}, {transform_indices = @transform_9, window_bounds = array<i64: 2, 1>}]} {
    %c0 = arith.constant 0 : index
    %c0_0 = arith.constant 0 : index
    %0 = vector.load %arg1[%c0, %c0_0] : memref<2x64xf32, #tpu.memory_space<vmem>>, vector<2x64xf32>
    %1 = arith.truncf %0 : vector<2x64xf32> to vector<2x64xbf16>
    %c0_1 = arith.constant 0 : index
    %c0_2 = arith.constant 0 : index
    %2 = vector.load %arg2[%c0_1, %c0_2] : memref<64x512xbf16, #tpu.memory_space<vmem>>, vector<64x512xbf16>
    %cst = arith.constant dense<0.000000e+00> : vector<2x512xf32>
    %3 = tpu.matmul %1, %2, %cst {dimension_numbers = #tpu.dot_dimension_numbers<[1], [0], [0], [1], [0, 0, 1, 1], [], []>} : vector<2x64xbf16>, vector<64x512xbf16>, vector<2x512xf32> -> vector<2x512xf32>
    %c0_3 = arith.constant 0 : index
    %c0_4 = arith.constant 0 : index
    %4 = vector.load %arg3[%c0_3, %c0_4] : memref<1x512xf32, #tpu.memory_space<vmem>>, vector<1x512xf32>
    %5 = vector.broadcast %4 : vector<1x512xf32> to vector<2x512xf32>
    %6 = arith.addf %3, %5 : vector<2x512xf32>
    %cst_5 = arith.constant 1.000000e-01 : f32
    %7 = vector.broadcast %cst_5 : f32 to vector<2x512xf32>
    %8 = arith.mulf %7, %6 : vector<2x512xf32>
    %9 = arith.maximumf %6, %8 : vector<2x512xf32>
    %10 = arith.truncf %9 : vector<2x512xf32> to vector<2x512xbf16>
    %c0_6 = arith.constant 0 : index
    %c0_7 = arith.constant 0 : index
    %11 = vector.load %arg4[%c0_6, %c0_7] : memref<512x512xbf16, #tpu.memory_space<vmem>>, vector<512x512xbf16>
    %cst_8 = arith.constant dense<0.000000e+00> : vector<2x512xf32>
    %12 = tpu.matmul %10, %11, %cst_8 {dimension_numbers = #tpu.dot_dimension_numbers<[1], [0], [0], [1], [0, 0, 1, 1], [], []>} : vector<2x512xbf16>, vector<512x512xbf16>, vector<2x512xf32> -> vector<2x512xf32>
    %c0_9 = arith.constant 0 : index
    %c0_10 = arith.constant 0 : index
    %13 = vector.load %arg5[%c0_9, %c0_10] : memref<1x512xf32, #tpu.memory_space<vmem>>, vector<1x512xf32>
    %14 = vector.broadcast %13 : vector<1x512xf32> to vector<2x512xf32>
    %15 = arith.addf %12, %14 : vector<2x512xf32>
    %cst_11 = arith.constant 1.000000e-01 : f32
    %16 = vector.broadcast %cst_11 : f32 to vector<2x512xf32>
    %17 = arith.mulf %16, %15 : vector<2x512xf32>
    %18 = arith.maximumf %15, %17 : vector<2x512xf32>
    %19 = arith.truncf %18 : vector<2x512xf32> to vector<2x512xbf16>
    %c0_12 = arith.constant 0 : index
    %c0_13 = arith.constant 0 : index
    %20 = vector.load %arg6[%c0_12, %c0_13] : memref<512x256xbf16, #tpu.memory_space<vmem>>, vector<512x256xbf16>
    %cst_14 = arith.constant dense<0.000000e+00> : vector<2x256xf32>
    %21 = tpu.matmul %19, %20, %cst_14 {dimension_numbers = #tpu.dot_dimension_numbers<[1], [0], [0], [1], [0, 0, 1, 1], [], []>} : vector<2x512xbf16>, vector<512x256xbf16>, vector<2x256xf32> -> vector<2x256xf32>
    %c0_15 = arith.constant 0 : index
    %c0_16 = arith.constant 0 : index
    %22 = vector.load %arg7[%c0_15, %c0_16] : memref<1x256xf32, #tpu.memory_space<vmem>>, vector<1x256xf32>
    %23 = vector.broadcast %22 : vector<1x256xf32> to vector<2x256xf32>
    %24 = arith.addf %21, %23 : vector<2x256xf32>
    %cst_17 = arith.constant 1.000000e-01 : f32
    %25 = vector.broadcast %cst_17 : f32 to vector<2x256xf32>
    %26 = arith.mulf %25, %24 : vector<2x256xf32>
    %27 = arith.maximumf %24, %26 : vector<2x256xf32>
    %c0_18 = arith.constant 0 : index
    %c0_19 = arith.constant 0 : index
    %28 = vector.load %arg8[%c0_18, %c0_19] : memref<1x256xf32, #tpu.memory_space<vmem>>, vector<1x256xf32>
    %29 = vector.broadcast %28 : vector<1x256xf32> to vector<2x256xf32>
    %30 = arith.mulf %27, %29 : vector<2x256xf32>
    %cst_20 = arith.constant dense<0.000000e+00> : vector<2xf32>
    %31 = vector.multi_reduction <add>, %30, %cst_20 [1] : vector<2x256xf32> to vector<2xf32>
    %32 = vector.shape_cast %31 : vector<2xf32> to vector<2x1xf32>
    %c0_21 = arith.constant 0 : index
    %c0_22 = arith.constant 0 : index
    %33 = vector.load %arg9[%c0_21, %c0_22] : memref<1x1xf32, #tpu.memory_space<vmem>>, vector<1x1xf32>
    %34 = vector.broadcast %33 : vector<1x1xf32> to vector<2x1xf32>
    %35 = arith.addf %32, %34 : vector<2x1xf32>
    %c0_23 = arith.constant 0 : index
    %c0_24 = arith.constant 0 : index
    %36 = vector.load %arg10[%c0_23, %c0_24] : memref<2x1xf32, #tpu.memory_space<vmem>>, vector<2x1xf32>
    tpu.vector_store %arg10[%c0_23, %c0_24], %35 {strides = array<i32>} : memref<2x1xf32, #tpu.memory_space<vmem>>, vector<2x1xf32>,
    return
  }
  func.func @transform_0(%arg0: i32) -> (i32, i32) {
    %c0_i32 = arith.constant 0 : i32
    %c0_i32_0 = arith.constant 0 : i32
    return %arg0, %c0_i32 : i32, i32
  }
  func.func @transform_1(%arg0: i32) -> (i32, i32) {
    %c0_i32 = arith.constant 0 : i32
    %c0_i32_0 = arith.constant 0 : i32
    %c0_i32_1 = arith.constant 0 : i32
    return %c0_i32, %c0_i32_0 : i32, i32
  }
  func.func @transform_2(%arg0: i32) -> (i32, i32) {
    %c0_i32 = arith.constant 0 : i32
    %c0_i32_0 = arith.constant 0 : i32
    %c0_i32_1 = arith.constant 0 : i32
    return %c0_i32, %c0_i32_0 : i32, i32
  }
  func.func @transform_3(%arg0: i32) -> (i32, i32) {
    %c0_i32 = arith.constant 0 : i32
    %c0_i32_0 = arith.constant 0 : i32
    %c0_i32_1 = arith.constant 0 : i32
    return %c0_i32, %c0_i32_0 : i32, i32
  }
  func.func @transform_4(%arg0: i32) -> (i32, i32) {
    %c0_i32 = arith.constant 0 : i32
    %c0_i32_0 = arith.constant 0 : i32
    %c0_i32_1 = arith.constant 0 : i32
    return %c0_i32, %c0_i32_0 : i32, i32
  }
  func.func @transform_5(%arg0: i32) -> (i32, i32) {
    %c0_i32 = arith.constant 0 : i32
    %c0_i32_0 = arith.constant 0 : i32
    %c0_i32_1 = arith.constant 0 : i32
    return %c0_i32, %c0_i32_0 : i32, i32
  }
  func.func @transform_6(%arg0: i32) -> (i32, i32) {
    %c0_i32 = arith.constant 0 : i32
    %c0_i32_0 = arith.constant 0 : i32
    %c0_i32_1 = arith.constant 0 : i32
    return %c0_i32, %c0_i32_0 : i32, i32
  }
  func.func @transform_7(%arg0: i32) -> (i32, i32) {
    %c0_i32 = arith.constant 0 : i32
    %c0_i32_0 = arith.constant 0 : i32
    %c0_i32_1 = arith.constant 0 : i32
    return %c0_i32, %c0_i32_0 : i32, i32
  }
  func.func @transform_8(%arg0: i32) -> (i32, i32) {
    %c0_i32 = arith.constant 0 : i32
    %c0_i32_0 = arith.constant 0 : i32
    %c0_i32_1 = arith.constant 0 : i32
    return %c0_i32, %c0_i32_0 : i32, i32
  }
  func.func @transform_9(%arg0: i32) -> (i32, i32) {
    %c0_i32 = arith.constant 0 : i32
    %c0_i32_0 = arith.constant 0 : i32
    return %arg0, %c0_i32 : i32, i32
  }
}

</mosaic_0001>

<bundles_post_ra>
// kernel: discriminator2_forward.1
= control target key start
LH: loop header
LB: loop body
LE: loop exit
PB: predicated region body
PF: predicated region fallthrough
CT: control target
= control target key end

     0   :  { %s2495_s0 = inlined_call_operand.vmem [shape: f32[2,64], index: 0, kind: input, shape index: {}]   ;;  %s2496_s1 = inlined_call_operand.hbm [shape: bf16[64,512], index: 1, kind: input, shape index: {}]   ;;  %s2497_s2 = inlined_call_operand.vmem [shape: f32[1,512], index: 2, kind: input, shape index: {}]   ;;  %s2498_s3 = inlined_call_operand.hbm [shape: bf16[512,512], index: 3, kind: input, shape index: {}]   ;;  %s2499_s4 = inlined_call_operand.vmem [shape: f32[1,512], index: 4, kind: input, shape index: {}]   ;;  %s2500_s5 = inlined_call_operand.hbm [shape: bf16[512,256], index: 5, kind: input, shape index: {}]   ;;  %s2501_s6 = inlined_call_operand.vmem [shape: f32[1,256], index: 6, kind: input, shape index: {}]   ;;  %s2502_s7 = inlined_call_operand.vmem [shape: f32[1,256], index: 7, kind: input, shape index: {}]   ;;  %s2503_s8 = inlined_call_operand.<no memory space> [shape: f32[1,1], index: 8, kind: input, shape index: {}]   ;;  %s2504_s9 = inlined_call_operand.vmem [shape: f32[2,1], index: 9, kind: output, shape index: {}]  }
   0x1   :  { %v14_v0 = vstv %s2503_s8 }
   0x2   :  { %15 = vst [vmem:[#allocation2] sm:$0x1] %v14_v0 }
   0x3   :  { %16 = vsyncpa [#allocation4], 0 }
   0x4   :  { %17 = vsyncpa [#allocation6], 0  ;;  %s2373_s11 = smov [#allocation5]   ;;  %s2374_s13 = smov [#allocation3]  }
   0x5   :  { %s39_s12 = sshll.u32 %s2373_s11, 4  ;;  %s25_s14 = sshll.u32 %s2374_s13, 4  ;;  %s40_s12 = int_to_ptr.vmem [resolvable:$true] %s39_s12  ;;  %s26_s14 = int_to_ptr.vmem [resolvable:$true] %s25_s14 }
   0x6   :  { %s2317_s15 = scalar_lea.vmem %s40_s12, 16384  ;;  %p2322_p1 = scmp.lt.s32.totalorder %s40_s12, %s40_s12 }
   0x7   :  { %p2318_p0 = scmp.ne.s32.totalorder %s40_s12, %s2317_s15  ;;  %p2323_p2 = scmp.lt.s32.totalorder %s2317_s15, %s2317_s15 }
   0x9   :  { %p2324_p3 = por %p2323_p2, %p2322_p1 }
   0xb   :  { %p2325_p4 = pnand %p2324_p3, %p2318_p0 }
   0xd   :  { %2328 = shalt.err (!%p2325_p4)
}
   0xe   :  { %s2375_s16 = smov 256   ;;  %s2376_s17 = smov 16  }
   0xf   :  { %45 = dma.hbm_to_vmem [thread:$0]  %s2498_s3, 16384, %s40_s12, [#allocation6], %s2375_s16, %s2375_s16, %s2376_s17  }
  0x10   :  { %s2337_s19 = scalar_lea.vmem %s26_s14, 2048  ;;  %p2342_p6 = scmp.lt.s32.totalorder %s26_s14, %s26_s14 }
  0x11   :  { %p2338_p5 = scmp.ne.s32.totalorder %s26_s14, %s2337_s19  ;;  %p2343_p7 = scmp.lt.s32.totalorder %s2337_s19, %s2337_s19 }
  0x13   :  { %p2344_p8 = por %p2343_p7, %p2342_p6 }
  0x15   :  { %p2345_p9 = pnand %p2344_p8, %p2338_p5 }
  0x17   :  { %2348 = shalt.err (!%p2345_p9)
}
  0x18   :  { %31 = dma.hbm_to_vmem [thread:$0]  %s2496_s1, 2048, %s26_s14, [#allocation4], %s2375_s16, %s2375_s16, %s2376_s17  }
  0x19   :  { %s2377_s22 = smov [#allocation7]  }
  0x1a   :  { %s53_s23 = sshll.u32 %s2377_s22, 4  ;;  %s54_s23 = int_to_ptr.vmem [resolvable:$true] %s53_s23 }
  0x1b   :  { %s2357_s24 = scalar_lea.vmem %s54_s23, 8192  ;;  %p2362_p11 = scmp.lt.s32.totalorder %s54_s23, %s54_s23 }
  0x1c   :  { %p2358_p10 = scmp.ne.s32.totalorder %s54_s23, %s2357_s24  ;;  %p2363_p12 = scmp.lt.s32.totalorder %s2357_s24, %s2357_s24 }
  0x1e   :  { %p2364_p13 = por %p2363_p12, %p2362_p11 }
  0x20   :  { %p2365_p0 = pnand %p2364_p13, %p2358_p10 }
  0x22   :  { %2368 = shalt.err (!%p2365_p0)
}
  0x23   :  { %s2378_s3 = smov 128   ;;  %s2379_s25 = smov 8  }
  0x24   :  { %59 = dma.hbm_to_vmem [thread:$0]  %s2500_s5, 8192, %s54_s23, [#allocation6], %s2378_s3, %s2378_s3, %s2379_s25  }
  0x25   :  { %2369 = dma.done.wait [#allocation4], 2048  }
  0x26   :  { %2370 = vsyncadd [#allocation4], 4294965248 }
  0x27   :  { %2371 = dma.done.wait [#allocation6], 24576  }
  0x28   :  { %2372 = vsyncadd [#allocation6], 4294942720  ;;  %v2380_v1 = vmov 0   ;;  %v1997_v2 = vld [vmem:[#allocation3 + $0x64] ss:$16 sps:$4 sm:$0xff]   ;;  %vm196_vm0 = vcmask 523264  }
  0x29   :  { %232 = vmatprep.mubr.bf16.mxu0 %v2380_v1  ;;  %273 = vmatprep.mubr.bf16.mxu1 %v2380_v1  ;;  %v1999_v3 = vld [vmem:[#allocation3 + $0x6c] ss:$16 sps:$4 sm:$0xff]   ;;  %v2001_v4 = vld [vmem:[#allocation3 + $0x60] ss:$16 sps:$4 sm:$0xff]   ;;  %v2002_v5 = vld [vmem:[#allocation3 + $0x68] ss:$16 sps:$4 sm:$0xff]  }
  0x2a   :  { %208 = vmatprep.subr.bf16.mxu0 %v1997_v2  ;;  %249 = vmatprep.subr.bf16.mxu1 %v1999_v3  ;;  %v2003_v6 = vld [vmem:[#allocation3 + $0x44] ss:$16 sps:$4 sm:$0xff]   ;;  %v2005_v7 = vld [vmem:[#allocation3 + $0x4c] ss:$16 sps:$4 sm:$0xff]   ;;  %v2007_v8 = vld [vmem:[#allocation3 + $0x40] ss:$16 sps:$4 sm:$0xff]  }
  0x2b   :  { %209 = vmatpush1.bf16.msra.mxu0 %v2001_v4  ;;  %250 = vmatpush1.bf16.msra.mxu1 %v2002_v5  ;;  %v2008_v9 = vld [vmem:[#allocation3 + $0x48] ss:$16 sps:$4 sm:$0xff]   ;;  %v2009_v10 = vld [vmem:[#allocation3 + $0x24] ss:$16 sps:$4 sm:$0xff]   ;;  %v2011_v11 = vld [vmem:[#allocation3 + $0x2c] ss:$16 sps:$4 sm:$0xff]  }
  0x2c   :  { %210 = vmatprep.subr.bf16.mxu0 %v2003_v6  ;;  %251 = vmatprep.subr.bf16.mxu1 %v2005_v7  ;;  %v2013_v12 = vld [vmem:[#allocation3 + $0x20] ss:$16 sps:$4 sm:$0xff]   ;;  %v2014_v13 = vld [vmem:[#allocation3 + $0x28] ss:$16 sps:$4 sm:$0xff]   ;;  %v2015_v14 = vld [vmem:[#allocation3 + $0x4] ss:$16 sps:$4 sm:$0xff]  }
  0x2d   :  { %v2017_v15 = vld [vmem:[#allocation3 + $0xc] ss:$16 sps:$4 sm:$0xff]   ;;  %v2019_v16 = vld [vmem:[#allocation3] ss:$16 sps:$4 sm:$0xff]   ;;  %v2020_v17 = vld [vmem:[#allocation3 + $0x8] ss:$16 sps:$4 sm:$0xff]  }
  0x2e   :  { %v76_v18 = vld [vmem:[%s2495_s0] sm:$0x3]  ;;  %v2023_v19 = vld [vmem:[#allocation5 + $0xe4] ss:$16 sps:$4 sm:$0xff]   ;;  %vm1756_vm1 = vcmask 1041408   ;;  %vm1770_vm2 = vcmask 1024  }
  0x2f   :  { %211 = vmatpush1.bf16.msra.mxu0 %v2007_v8  ;;  %252 = vmatpush1.bf16.msra.mxu1 %v2008_v9  ;;  %v2026_v20 = vld [vmem:[#allocation5 + $0x2e4] ss:$16 sps:$4 sm:$0xff]   ;;  %v77_v21 = vpack.c.bf16 %v76_v18, %v76_v18  ;;  %v2021_v22 = vld [vmem:[#allocation5 + $0xe0] ss:$16 sps:$4 sm:$0xff]  }
  0x30   :  { %212 = vmatprep.subr.bf16.mxu0 %v2009_v10  ;;  %253 = vmatprep.subr.bf16.mxu1 %v2011_v11  ;;  %v2024_v23 = vld [vmem:[#allocation5 + $0x2e0] ss:$16 sps:$4 sm:$0xff]   ;;  %v2029_v24 = vld [vmem:[#allocation5 + $0xc4] ss:$16 sps:$4 sm:$0xff]  }
  0x31   :  { %v2032_v25 = vld [vmem:[#allocation5 + $0x2c4] ss:$16 sps:$4 sm:$0xff]   ;;  %v2027_v26 = vld [vmem:[#allocation5 + $0xc0] ss:$16 sps:$4 sm:$0xff]  }
  0x32   :  { %v2030_v27 = vld [vmem:[#allocation5 + $0x2c0] ss:$16 sps:$4 sm:$0xff]   ;;  %v2035_v28 = vld [vmem:[#allocation5 + $0xa4] ss:$16 sps:$4 sm:$0xff]  }
  0x33   :  { %213 = vmatpush1.bf16.msra.mxu0 %v2013_v12  ;;  %254 = vmatpush1.bf16.msra.mxu1 %v2014_v13  ;;  %v2038_v29 = vld [vmem:[#allocation5 + $0x2a4] ss:$16 sps:$4 sm:$0xff]   ;;  %v2033_v30 = vld [vmem:[#allocation5 + $0xa0] ss:$16 sps:$4 sm:$0xff]  }
  0x34   :  { %214 = vmatprep.subr.bf16.mxu0 %v2015_v14  ;;  %255 = vmatprep.subr.bf16.mxu1 %v2017_v15  ;;  %v2036_v31 = vld [vmem:[#allocation5 + $0x2a0] ss:$16 sps:$4 sm:$0xff]   ;;  %v2041_v32 = vld [vmem:[#allocation5 + $0x84] ss:$16 sps:$4 sm:$0xff]  }
  0x35   :  { %v2044_v33 = vld [vmem:[#allocation5 + $0x284] ss:$16 sps:$4 sm:$0xff]   ;;  %v2039_v34 = vld [vmem:[#allocation5 + $0x80] ss:$16 sps:$4 sm:$0xff]  }
  0x36   :  { %v2042_v35 = vld [vmem:[#allocation5 + $0x280] ss:$16 sps:$4 sm:$0xff]   ;;  %v2047_v36 = vld [vmem:[#allocation5 + $0x64] ss:$16 sps:$4 sm:$0xff]  }
  0x37   :  { %215 = vmatpush1.bf16.msra.mxu0 %v2019_v16  ;;  %256 = vmatpush1.bf16.msra.mxu1 %v2020_v17  ;;  %v2050_v37 = vld [vmem:[#allocation5 + $0x264] ss:$16 sps:$4 sm:$0xff]   ;;  %v2045_v38 = vld [vmem:[#allocation5 + $0x60] ss:$16 sps:$4 sm:$0xff]  }
  0x38   :  { %1084 = vmatprep.subr.bf16.mxu0 %v2023_v19  ;;  %1125 = vmatprep.subr.bf16.mxu1 %v2026_v20  ;;  %v2048_v39 = vld [vmem:[#allocation5 + $0x260] ss:$16 sps:$4 sm:$0xff]   ;;  %v2053_v40 = vld [vmem:[#allocation5 + $0x44] ss:$16 sps:$4 sm:$0xff]   ;;  %v2119_v20 = vld [vmem:[#allocation5 + $0xec] ss:$16 sps:$4 sm:$0xff]  }
  0x39   :  { %v2056_v41 = vld [vmem:[#allocation5 + $0x244] ss:$16 sps:$4 sm:$0xff]   ;;  %v2051_v42 = vld [vmem:[#allocation5 + $0x40] ss:$16 sps:$4 sm:$0xff]  }
  0x3a   :  { %1794 = vmatmul.mubr.msk.bf16.vlgmr.msra.gmra.mxu0 %vm196_vm0, %v77_v21  ;;  %1795 = vmatmul.mubr.msk.bf16.vlgmr.msra.gmra.mxu1 %vm196_vm0, %v77_v21  ;;  %v2054_v43 = vld [vmem:[#allocation5 + $0x240] ss:$16 sps:$4 sm:$0xff]   ;;  %v2059_v44 = vld [vmem:[#allocation5 + $0x24] ss:$16 sps:$4 sm:$0xff]   ;;  %v2122_v21 = vld [vmem:[#allocation5 + $0x2ec] ss:$16 sps:$4 sm:$0xff]  }
  0x3b   :  { %1085 = vmatpush1.bf16.msra.mxu0 %v2021_v22  ;;  %1126 = vmatpush1.bf16.msra.mxu1 %v2024_v23  ;;  %v2062_v45 = vld [vmem:[#allocation5 + $0x224] ss:$16 sps:$4 sm:$0xff]   ;;  %v2057_v46 = vld [vmem:[#allocation5 + $0x20] ss:$16 sps:$4 sm:$0xff]   ;;  %v96_v22 = vlaneseq }
  0x3c   :  { %1086 = vmatprep.subr.bf16.mxu0 %v2029_v24  ;;  %1127 = vmatprep.subr.bf16.mxu1 %v2032_v25  ;;  %v2060_v47 = vld [vmem:[#allocation5 + $0x220] ss:$16 sps:$4 sm:$0xff]   ;;  %v2065_v48 = vld [vmem:[#allocation5 + $0x4] ss:$16 sps:$4 sm:$0xff]  }
  0x3d   :  { %v2068_v49 = vld [vmem:[#allocation5 + $0x204] ss:$16 sps:$4 sm:$0xff]   ;;  %v2063_v50 = vld [vmem:[#allocation5] ss:$16 sps:$4 sm:$0xff]   ;;  %v2446_v23 = vshrl.u32 %v96_v22, 7 }
  0x3e   :  { %v2066_v51 = vld [vmem:[#allocation5 + $0x200] ss:$16 sps:$4 sm:$0xff]   ;;  %v2071_v52 = vld [vmem:[#allocation5 + $0x1e4] ss:$16 sps:$4 sm:$0xff]   ;;  %v2162_v22 = vld [vmem:[#allocation5 + $0x208] ss:$16 sps:$4 sm:$0xff]  }
  0x3f   :  { %1087 = vmatpush1.bf16.msra.mxu0 %v2027_v26  ;;  %1128 = vmatpush1.bf16.msra.mxu1 %v2030_v27  ;;  %v2074_v53 = vld [vmem:[#allocation5 + $0x3e4] ss:$16 sps:$4 sm:$0xff]   ;;  %v2069_v54 = vld [vmem:[#allocation5 + $0x1e0] ss:$16 sps:$4 sm:$0xff]   ;;  %v2449_v24 = vsub.s32 0, %v2446_v23  ;;  %v106_v25 = vsub.s32 2, %v2446_v23 }
  0x40   :  { %1088 = vmatprep.subr.bf16.mxu0 %v2035_v28  ;;  %1129 = vmatprep.subr.bf16.mxu1 %v2038_v29  ;;  %v2072_v55 = vld [vmem:[#allocation5 + $0x3e0] ss:$16 sps:$4 sm:$0xff]   ;;  %v2077_v56 = vld [vmem:[#allocation5 + $0x1c4] ss:$16 sps:$4 sm:$0xff]   ;;  %v2456_v27 = vsub.s32 1, %v2446_v23  ;;  %v110_v28 = vsub.s32 3, %v2446_v23 }
  0x41   :  { %v2080_v57 = vld [vmem:[#allocation5 + $0x3c4] ss:$16 sps:$4 sm:$0xff]   ;;  %v2075_v58 = vld [vmem:[#allocation5 + $0x1c0] ss:$16 sps:$4 sm:$0xff]  }
  0x42   :  { %v2078_v59 = vld [vmem:[#allocation5 + $0x3c0] ss:$16 sps:$4 sm:$0xff]   ;;  %v2083_v60 = vld [vmem:[#allocation5 + $0x1a4] ss:$16 sps:$4 sm:$0xff]  }
  0x43   :  { %1089 = vmatpush1.bf16.msra.mxu0 %v2033_v30  ;;  %1130 = vmatpush1.bf16.msra.mxu1 %v2036_v31  ;;  %v2086_v61 = vld [vmem:[#allocation5 + $0x3a4] ss:$16 sps:$4 sm:$0xff]   ;;  %v2081_v62 = vld [vmem:[#allocation5 + $0x1a0] ss:$16 sps:$4 sm:$0xff]  }
  0x44   :  { %1090 = vmatprep.subr.bf16.mxu0 %v2041_v32  ;;  %1131 = vmatprep.subr.bf16.mxu1 %v2044_v33  ;;  %v2084_v63 = vld [vmem:[#allocation5 + $0x3a0] ss:$16 sps:$4 sm:$0xff]   ;;  %v2089_v0 = vld [vmem:[#allocation5 + $0x184] ss:$16 sps:$4 sm:$0xff]  }
  0x45   :  { %v2092_v1 = vld [vmem:[#allocation5 + $0x384] ss:$16 sps:$4 sm:$0xff]   ;;  %v2087_v2 = vld [vmem:[#allocation5 + $0x180] ss:$16 sps:$4 sm:$0xff]  }
  0x46   :  { %v2090_v3 = vld [vmem:[#allocation5 + $0x380] ss:$16 sps:$4 sm:$0xff]   ;;  %v2095_v4 = vld [vmem:[#allocation5 + $0x164] ss:$16 sps:$4 sm:$0xff]  }
  0x47   :  { %1091 = vmatpush1.bf16.msra.mxu0 %v2039_v34  ;;  %1132 = vmatpush1.bf16.msra.mxu1 %v2042_v35  ;;  %v2098_v5 = vld [vmem:[#allocation5 + $0x364] ss:$16 sps:$4 sm:$0xff]   ;;  %v2093_v6 = vld [vmem:[#allocation5 + $0x160] ss:$16 sps:$4 sm:$0xff]  }
  0x48   :  { %1092 = vmatprep.subr.bf16.mxu0 %v2047_v36  ;;  %1133 = vmatprep.subr.bf16.mxu1 %v2050_v37  ;;  %v2096_v7 = vld [vmem:[#allocation5 + $0x360] ss:$16 sps:$4 sm:$0xff]   ;;  %v2101_v8 = vld [vmem:[#allocation5 + $0x144] ss:$16 sps:$4 sm:$0xff]  }
  0x49   :  { %v2104_v9 = vld [vmem:[#allocation5 + $0x344] ss:$16 sps:$4 sm:$0xff]   ;;  %v2099_v10 = vld [vmem:[#allocation5 + $0x140] ss:$16 sps:$4 sm:$0xff]  }
  0x4a   :  { %v2102_v11 = vld [vmem:[#allocation5 + $0x340] ss:$16 sps:$4 sm:$0xff]   ;;  %v2107_v12 = vld [vmem:[#allocation5 + $0x124] ss:$16 sps:$4 sm:$0xff]  }
  0x4b   :  { %1093 = vmatpush1.bf16.msra.mxu0 %v2045_v38  ;;  %1134 = vmatpush1.bf16.msra.mxu1 %v2048_v39  ;;  %v2110_v13 = vld [vmem:[#allocation5 + $0x324] ss:$16 sps:$4 sm:$0xff]   ;;  %v2105_v14 = vld [vmem:[#allocation5 + $0x120] ss:$16 sps:$4 sm:$0xff]  }
  0x4c   :  { %1094 = vmatprep.subr.bf16.mxu0 %v2053_v40  ;;  %1135 = vmatprep.subr.bf16.mxu1 %v2056_v41  ;;  %v2108_v15 = vld [vmem:[#allocation5 + $0x320] ss:$16 sps:$4 sm:$0xff]   ;;  %v2113_v16 = vld [vmem:[#allocation5 + $0x104] ss:$16 sps:$4 sm:$0xff]  }
  0x4d   :  { %v2116_v17 = vld [vmem:[#allocation5 + $0x304] ss:$16 sps:$4 sm:$0xff]   ;;  %v2111_v18 = vld [vmem:[#allocation5 + $0x100] ss:$16 sps:$4 sm:$0xff]  }
  0x4e   :  { %v2114_v19 = vld [vmem:[#allocation5 + $0x300] ss:$16 sps:$4 sm:$0xff]  }
  0x4f   :  { %1095 = vmatpush1.bf16.msra.mxu0 %v2051_v42  ;;  %1136 = vmatpush1.bf16.msra.mxu1 %v2054_v43  ;;  %v94_v26 = vld [vmem:[%s2497_s2] sm:$0xf] }
  0x50   :  { %1096 = vmatprep.subr.bf16.mxu0 %v2059_v44  ;;  %1137 = vmatprep.subr.bf16.mxu1 %v2062_v45  ;;  %v99_v29 = vrot.slane %v94_v26, %v2449_v24  ;;  %v107_v30 = vrot.slane %v94_v26, %v106_v25  ;;  %v103_v31 = vrot.slane %v94_v26, %v2456_v27 }
  0x51   :  { %v111_v32 = vrot.slane %v94_v26, %v110_v28  ;;  %v2167_v26 = vld [vmem:[#allocation5 + $0x1ec] ss:$16 sps:$4 sm:$0xff]  }
  0x53   :  { %1097 = vmatpush1.bf16.msra.mxu0 %v2057_v46  ;;  %1138 = vmatpush1.bf16.msra.mxu1 %v2060_v47 }
  0x54   :  { %1098 = vmatprep.subr.bf16.mxu0 %v2065_v48  ;;  %1139 = vmatprep.subr.bf16.mxu1 %v2068_v49 }
  0x57   :  { %1099 = vmatpush1.bf16.msra.mxu0 %v2063_v50  ;;  %1140 = vmatpush1.bf16.msra.mxu1 %v2066_v51 }
  0x58   :  { %1100 = vmatprep.subr.bf16.mxu0 %v2071_v52  ;;  %1141 = vmatprep.subr.bf16.mxu1 %v2074_v53 }
  0x5b   :  { %1101 = vmatpush2.bf16.msra.mxu0 %v2069_v54  ;;  %1142 = vmatpush2.bf16.msra.mxu1 %v2072_v55  ;;  %v2117_v55 = vld [vmem:[#allocation5 + $0xe8] ss:$16 sps:$4 sm:$0xff]  }
  0x5c   :  { %1102 = vmatprep.subr.bf16.mxu0 %v2077_v56  ;;  %1143 = vmatprep.subr.bf16.mxu1 %v2080_v57  ;;  %v2120_v56 = vld [vmem:[#allocation5 + $0x2e8] ss:$16 sps:$4 sm:$0xff]  }
  0x5f   :  { %1103 = vmatpush2.bf16.msra.mxu0 %v2075_v58  ;;  %1144 = vmatpush2.bf16.msra.mxu1 %v2078_v59  ;;  %v2125_v59 = vld [vmem:[#allocation5 + $0xcc] ss:$16 sps:$4 sm:$0xff]  }
  0x60   :  { %1104 = vmatprep.subr.bf16.mxu0 %v2083_v60  ;;  %1145 = vmatprep.subr.bf16.mxu1 %v2086_v61  ;;  %v2128_v60 = vld [vmem:[#allocation5 + $0x2cc] ss:$16 sps:$4 sm:$0xff]   ;;  %v2123_v61 = vld [vmem:[#allocation5 + $0xc8] ss:$16 sps:$4 sm:$0xff]  }
  0x63   :  { %1105 = vmatpush2.bf16.msra.mxu0 %v2081_v62  ;;  %1146 = vmatpush2.bf16.msra.mxu1 %v2084_v63  ;;  %v2126_v62 = vld [vmem:[#allocation5 + $0x2c8] ss:$16 sps:$4 sm:$0xff]   ;;  %v2131_v63 = vld [vmem:[#allocation5 + $0xac] ss:$16 sps:$4 sm:$0xff]  }
  0x64   :  { %1106 = vmatprep.subr.bf16.mxu0 %v2089_v0  ;;  %1147 = vmatprep.subr.bf16.mxu1 %v2092_v1  ;;  %v2134_v0 = vld [vmem:[#allocation5 + $0x2ac] ss:$16 sps:$4 sm:$0xff]   ;;  %v2129_v1 = vld [vmem:[#allocation5 + $0xa8] ss:$16 sps:$4 sm:$0xff]  }
  0x67   :  { %1107 = vmatpush2.bf16.msra.mxu0 %v2087_v2  ;;  %1148 = vmatpush2.bf16.msra.mxu1 %v2090_v3  ;;  %v2132_v2 = vld [vmem:[#allocation5 + $0x2a8] ss:$16 sps:$4 sm:$0xff]   ;;  %v2137_v3 = vld [vmem:[#allocation5 + $0x8c] ss:$16 sps:$4 sm:$0xff]  }
  0x68   :  { %1108 = vmatprep.subr.bf16.mxu0 %v2095_v4  ;;  %1149 = vmatprep.subr.bf16.mxu1 %v2098_v5  ;;  %v2140_v4 = vld [vmem:[#allocation5 + $0x28c] ss:$16 sps:$4 sm:$0xff]   ;;  %v2135_v5 = vld [vmem:[#allocation5 + $0x88] ss:$16 sps:$4 sm:$0xff]  }
  0x6b   :  { %1109 = vmatpush2.bf16.msra.mxu0 %v2093_v6  ;;  %1150 = vmatpush2.bf16.msra.mxu1 %v2096_v7  ;;  %v2138_v6 = vld [vmem:[#allocation5 + $0x288] ss:$16 sps:$4 sm:$0xff]   ;;  %v2143_v7 = vld [vmem:[#allocation5 + $0x6c] ss:$16 sps:$4 sm:$0xff]  }
  0x6c   :  { %1110 = vmatprep.subr.bf16.mxu0 %v2101_v8  ;;  %1151 = vmatprep.subr.bf16.mxu1 %v2104_v9  ;;  %v2146_v8 = vld [vmem:[#allocation5 + $0x26c] ss:$16 sps:$4 sm:$0xff]   ;;  %v2141_v9 = vld [vmem:[#allocation5 + $0x68] ss:$16 sps:$4 sm:$0xff]  }
  0x6f   :  { %1111 = vmatpush2.bf16.msra.mxu0 %v2099_v10  ;;  %1152 = vmatpush2.bf16.msra.mxu1 %v2102_v11  ;;  %v2144_v10 = vld [vmem:[#allocation5 + $0x268] ss:$16 sps:$4 sm:$0xff]   ;;  %v2149_v11 = vld [vmem:[#allocation5 + $0x4c] ss:$16 sps:$4 sm:$0xff]  }
  0x70   :  { %1112 = vmatprep.subr.bf16.mxu0 %v2107_v12  ;;  %1153 = vmatprep.subr.bf16.mxu1 %v2110_v13  ;;  %v2152_v12 = vld [vmem:[#allocation5 + $0x24c] ss:$16 sps:$4 sm:$0xff]   ;;  %v2147_v13 = vld [vmem:[#allocation5 + $0x48] ss:$16 sps:$4 sm:$0xff]  }
  0x73   :  { %1113 = vmatpush2.bf16.msra.mxu0 %v2105_v14  ;;  %1154 = vmatpush2.bf16.msra.mxu1 %v2108_v15  ;;  %v2150_v14 = vld [vmem:[#allocation5 + $0x248] ss:$16 sps:$4 sm:$0xff]   ;;  %v2155_v15 = vld [vmem:[#allocation5 + $0x2c] ss:$16 sps:$4 sm:$0xff]  }
  0x74   :  { %1114 = vmatprep.subr.bf16.mxu0 %v2113_v16  ;;  %1155 = vmatprep.subr.bf16.mxu1 %v2116_v17  ;;  %v2158_v16 = vld [vmem:[#allocation5 + $0x22c] ss:$16 sps:$4 sm:$0xff]   ;;  %v2153_v17 = vld [vmem:[#allocation5 + $0x28] ss:$16 sps:$4 sm:$0xff]  }
  0x77   :  { %1115 = vmatpush2.bf16.msra.mxu0 %v2111_v18  ;;  %1156 = vmatpush2.bf16.msra.mxu1 %v2114_v19  ;;  %v2156_v18 = vld [vmem:[#allocation5 + $0x228] ss:$16 sps:$4 sm:$0xff]   ;;  %v2161_v19 = vld [vmem:[#allocation5 + $0xc] ss:$16 sps:$4 sm:$0xff]  }
  0x78   :  { %1166 = vmatprep.subr.bf16.mxu0 %v2119_v20  ;;  %1207 = vmatprep.subr.bf16.mxu1 %v2122_v21  ;;  %v2164_v20 = vld [vmem:[#allocation5 + $0x20c] ss:$16 sps:$4 sm:$0xff]   ;;  %v2159_v21 = vld [vmem:[#allocation5 + $0x8] ss:$16 sps:$4 sm:$0xff]  }
  0xfa   :  { %v234_v33 = vpop.f32.mrf.mxu0  ;;  %v275_v34 = vpop.f32.mrf.mxu1 }
  0xfb   :  { %v235_v35 = vadd.f32 %v234_v33, %v99_v29  ;;  %v276_v36 = vadd.f32 %v275_v34, %v107_v30  ;;  %v2170_v29 = vld [vmem:[#allocation5 + $0x3ec] ss:$16 sps:$4 sm:$0xff]   ;;  %v2165_v30 = vld [vmem:[#allocation5 + $0x1e8] ss:$16 sps:$4 sm:$0xff]  }
  0xfc   :  { %v236_v37 = vpop.f32.mrf.mxu0  ;;  %v277_v38 = vpop.f32.mrf.mxu1  ;;  %v2176_v33 = vld [vmem:[#allocation5 + $0x3cc] ss:$16 sps:$4 sm:$0xff]   ;;  %v2171_v34 = vld [vmem:[#allocation5 + $0x1c8] ss:$16 sps:$4 sm:$0xff]  }
  0xfd   :  { %v282_v39 = vmul.f32 0.1, %v235_v35  ;;  %v284_v40 = vmul.f32 0.1, %v276_v36  ;;  %v237_v41 = vadd.f32 %v236_v37, %v103_v31  ;;  %v278_v42 = vadd.f32 %v277_v38, %v111_v32  ;;  %v2168_v31 = vld [vmem:[#allocation5 + $0x3e8] ss:$16 sps:$4 sm:$0xff]  }
  0xfe   :  { %v238_v43 = vpop.f32.mrf.mxu0  ;;  %v279_v44 = vpop.f32.mrf.mxu1  ;;  %v2173_v32 = vld [vmem:[#allocation5 + $0x1cc] ss:$16 sps:$4 sm:$0xff]   ;;  %v2177_v38 = vld [vmem:[#allocation5 + $0x1a8] ss:$16 sps:$4 sm:$0xff]  }
  0xff   :  { %v283_v45 = vmul.f32 0.1, %v237_v41  ;;  %v285_v46 = vmul.f32 0.1, %v278_v42  ;;  %v286_v47 = vmax.f32 %v235_v35, %v282_v39  ;;  %v288_v48 = vmax.f32 %v276_v36, %v284_v40  ;;  %v2174_v35 = vld [vmem:[#allocation5 + $0x3c8] ss:$16 sps:$4 sm:$0xff]  }
 0x100   :  { %v239_v49 = vpop.f32.mrf.mxu0  ;;  %v280_v50 = vpop.f32.mrf.mxu1  ;;  %v2179_v36 = vld [vmem:[#allocation5 + $0x1ac] ss:$16 sps:$4 sm:$0xff]   ;;  %v2180_v39 = vld [vmem:[#allocation5 + $0x3a8] ss:$16 sps:$4 sm:$0xff]  }
 0x101   :  { %v287_v51 = vmax.f32 %v237_v41, %v283_v45  ;;  %v289_v52 = vmax.f32 %v278_v42, %v285_v46  ;;  %v2465_v57 = vpack.c.bf16 %v286_v47, %v286_v47  ;;  %v2467_v58 = vpack.c.bf16 %v288_v48, %v288_v48  ;;  %v2182_v37 = vld [vmem:[#allocation5 + $0x3ac] ss:$16 sps:$4 sm:$0xff]   ;;  %v2183_v42 = vld [vmem:[#allocation5 + $0x188] ss:$16 sps:$4 sm:$0xff]  }
 0x102   :  { %v2185_v40 = vld [vmem:[#allocation5 + $0x18c] ss:$16 sps:$4 sm:$0xff]   ;;  %v2186_v43 = vld [vmem:[#allocation5 + $0x388] ss:$16 sps:$4 sm:$0xff]  }
 0x103   :  { %v291_v53 = vpack.c.bf16 %v287_v51, %v287_v51  ;;  %v293_v54 = vpack.c.bf16 %v289_v52, %v289_v52  ;;  %v2188_v41 = vld [vmem:[#allocation5 + $0x38c] ss:$16 sps:$4 sm:$0xff]   ;;  %v2189_v46 = vld [vmem:[#allocation5 + $0x168] ss:$16 sps:$4 sm:$0xff]  }
 0x104   :  { %v2191_v44 = vld [vmem:[#allocation5 + $0x16c] ss:$16 sps:$4 sm:$0xff]   ;;  %v2192_v47 = vld [vmem:[#allocation5 + $0x368] ss:$16 sps:$4 sm:$0xff]  }
 0x105   :  { %1116 = vmatprep.mubr.bf16.mxu0 %v291_v53  ;;  %1157 = vmatprep.mubr.bf16.mxu1 %v293_v54  ;;  %v2194_v45 = vld [vmem:[#allocation5 + $0x36c] ss:$16 sps:$4 sm:$0xff]   ;;  %v2195_v50 = vld [vmem:[#allocation5 + $0x148] ss:$16 sps:$4 sm:$0xff]  }
 0x106   :  { %1117 = vmatmul.mubr.bf16.vlgmr.msra.gmra.mxu0 %v2465_v57  ;;  %1158 = vmatmul.mubr.bf16.vlgmr.msra.gmra.mxu1 %v2467_v58  ;;  %v2197_v48 = vld [vmem:[#allocation5 + $0x14c] ss:$16 sps:$4 sm:$0xff]   ;;  %v2198_v51 = vld [vmem:[#allocation5 + $0x348] ss:$16 sps:$4 sm:$0xff]  }
 0x107   :  { %1167 = vmatpush1.bf16.msra.mxu0 %v2117_v55  ;;  %1208 = vmatpush1.bf16.msra.mxu1 %v2120_v56  ;;  %v2200_v49 = vld [vmem:[#allocation5 + $0x34c] ss:$16 sps:$4 sm:$0xff]   ;;  %v2204_v55 = vld [vmem:[#allocation5 + $0x328] ss:$16 sps:$4 sm:$0xff]  }
 0x108   :  { %1198 = vmatprep.mubr.bf16.mxu0 %v291_v53  ;;  %1239 = vmatprep.mubr.bf16.mxu1 %v293_v54  ;;  %v2203_v52 = vld [vmem:[#allocation5 + $0x12c] ss:$16 sps:$4 sm:$0xff]   ;;  %v2201_v54 = vld [vmem:[#allocation5 + $0x128] ss:$16 sps:$4 sm:$0xff]  }
 0x109   :  { %1168 = vmatprep.subr.bf16.mxu0 %v2125_v59  ;;  %1209 = vmatprep.subr.bf16.mxu1 %v2128_v60  ;;  %v2206_v53 = vld [vmem:[#allocation5 + $0x32c] ss:$16 sps:$4 sm:$0xff]   ;;  %v2207_v60 = vld [vmem:[#allocation5 + $0x108] ss:$16 sps:$4 sm:$0xff]  }
 0x10a   :  { %v2209_v56 = vld [vmem:[#allocation5 + $0x10c] ss:$16 sps:$4 sm:$0xff]  }
 0x10b   :  { %1169 = vmatpush1.bf16.msra.mxu0 %v2123_v61  ;;  %1210 = vmatpush1.bf16.msra.mxu1 %v2126_v62  ;;  %v2212_v59 = vld [vmem:[#allocation5 + $0x30c] ss:$16 sps:$4 sm:$0xff]   ;;  %v2210_v61 = vld [vmem:[#allocation5 + $0x308] ss:$16 sps:$4 sm:$0xff]  }
 0x10c   :  { %1170 = vmatprep.subr.bf16.mxu0 %v2131_v63  ;;  %1211 = vmatprep.subr.bf16.mxu1 %v2134_v0  ;;  %v2215_v62 = vld [vmem:[#allocation7 + $0x74] ss:$8 sps:$4 sm:$0xff]   ;;  %v2213_v63 = vld [vmem:[#allocation7 + $0x70] ss:$8 sps:$4 sm:$0xff]   ;;  %v2218_v0 = vld [vmem:[#allocation7 + $0x64] ss:$8 sps:$4 sm:$0xff]  }
 0x10f   :  { %1171 = vmatpush1.bf16.msra.mxu0 %v2129_v1  ;;  %1212 = vmatpush1.bf16.msra.mxu1 %v2132_v2  ;;  %v2216_v1 = vld [vmem:[#allocation7 + $0x60] ss:$8 sps:$4 sm:$0xff]   ;;  %v2221_v2 = vld [vmem:[#allocation7 + $0x54] ss:$8 sps:$4 sm:$0xff]  }
 0x110   :  { %1172 = vmatprep.subr.bf16.mxu0 %v2137_v3  ;;  %1213 = vmatprep.subr.bf16.mxu1 %v2140_v4  ;;  %v2219_v3 = vld [vmem:[#allocation7 + $0x50] ss:$8 sps:$4 sm:$0xff]   ;;  %v2224_v4 = vld [vmem:[#allocation7 + $0x44] ss:$8 sps:$4 sm:$0xff]  }
 0x113   :  { %1173 = vmatpush1.bf16.msra.mxu0 %v2135_v5  ;;  %1214 = vmatpush1.bf16.msra.mxu1 %v2138_v6  ;;  %v2222_v5 = vld [vmem:[#allocation7 + $0x40] ss:$8 sps:$4 sm:$0xff]   ;;  %v2227_v6 = vld [vmem:[#allocation7 + $0x34] ss:$8 sps:$4 sm:$0xff]  }
 0x114   :  { %1174 = vmatprep.subr.bf16.mxu0 %v2143_v7  ;;  %1215 = vmatprep.subr.bf16.mxu1 %v2146_v8  ;;  %v2263_v7 = vld [vmem:[#allocation7 + $0x174] ss:$8 sps:$4 sm:$0xff]   ;;  %v2225_v8 = vld [vmem:[#allocation7 + $0x30] ss:$8 sps:$4 sm:$0xff]  }
 0x117   :  { %1175 = vmatpush1.bf16.msra.mxu0 %v2141_v9  ;;  %1216 = vmatpush1.bf16.msra.mxu1 %v2144_v10  ;;  %v2261_v9 = vld [vmem:[#allocation7 + $0x170] ss:$8 sps:$4 sm:$0xff]   ;;  %v2264_v10 = vld [vmem:[#allocation7 + $0x160] ss:$8 sps:$4 sm:$0xff]  }
 0x118   :  { %1176 = vmatprep.subr.bf16.mxu0 %v2149_v11  ;;  %1217 = vmatprep.subr.bf16.mxu1 %v2152_v12  ;;  %v2269_v11 = vld [vmem:[#allocation7 + $0x154] ss:$8 sps:$4 sm:$0xff]   ;;  %v2228_v12 = vld [vmem:[#allocation7 + $0x20] ss:$8 sps:$4 sm:$0xff]  }
 0x11b   :  { %1177 = vmatpush1.bf16.msra.mxu0 %v2147_v13  ;;  %1218 = vmatpush1.bf16.msra.mxu1 %v2150_v14  ;;  %v2233_v13 = vld [vmem:[#allocation7 + $0x14] ss:$8 sps:$4 sm:$0xff]   ;;  %v2267_v14 = vld [vmem:[#allocation7 + $0x150] ss:$8 sps:$4 sm:$0xff]  }
 0x11c   :  { %1178 = vmatprep.subr.bf16.mxu0 %v2155_v15  ;;  %1219 = vmatprep.subr.bf16.mxu1 %v2158_v16  ;;  %v2272_v15 = vld [vmem:[#allocation7 + $0x144] ss:$8 sps:$4 sm:$0xff]   ;;  %v2231_v16 = vld [vmem:[#allocation7 + $0x10] ss:$8 sps:$4 sm:$0xff]  }
 0x11f   :  { %1179 = vmatpush1.bf16.msra.mxu0 %v2153_v17  ;;  %1220 = vmatpush1.bf16.msra.mxu1 %v2156_v18  ;;  %v2236_v17 = vld [vmem:[#allocation7 + $0x4] ss:$8 sps:$4 sm:$0xff]   ;;  %v2270_v18 = vld [vmem:[#allocation7 + $0x140] ss:$8 sps:$4 sm:$0xff]  }
 0x120   :  { %1180 = vmatprep.subr.bf16.mxu0 %v2161_v19  ;;  %1221 = vmatprep.subr.bf16.mxu1 %v2164_v20  ;;  %v2275_v19 = vld [vmem:[#allocation7 + $0x134] ss:$8 sps:$4 sm:$0xff]   ;;  %v2234_v20 = vld [vmem:[#allocation7] ss:$8 sps:$4 sm:$0xff]  }
 0x123   :  { %1181 = vmatpush1.bf16.msra.mxu0 %v2159_v21  ;;  %1222 = vmatpush1.bf16.msra.mxu1 %v2162_v22  ;;  %v2239_v21 = vld [vmem:[#allocation7 + $0xf4] ss:$8 sps:$4 sm:$0xff]   ;;  %v2273_v22 = vld [vmem:[#allocation7 + $0x130] ss:$8 sps:$4 sm:$0xff]  }
 0x124   :  { %1182 = vmatprep.subr.bf16.mxu0 %v2167_v26  ;;  %1223 = vmatprep.subr.bf16.mxu1 %v2170_v29  ;;  %v2278_v26 = vld [vmem:[#allocation7 + $0x124] ss:$8 sps:$4 sm:$0xff]   ;;  %v2237_v29 = vld [vmem:[#allocation7 + $0xf0] ss:$8 sps:$4 sm:$0xff]  }
 0x127   :  { %1183 = vmatpush2.bf16.msra.mxu0 %v2165_v30  ;;  %1224 = vmatpush2.bf16.msra.mxu1 %v2168_v31  ;;  %v2242_v30 = vld [vmem:[#allocation7 + $0xe4] ss:$8 sps:$4 sm:$0xff]   ;;  %v2276_v31 = vld [vmem:[#allocation7 + $0x120] ss:$8 sps:$4 sm:$0xff]  }
 0x128   :  { %1184 = vmatprep.subr.bf16.mxu0 %v2173_v32  ;;  %1225 = vmatprep.subr.bf16.mxu1 %v2176_v33  ;;  %v2281_v32 = vld [vmem:[#allocation7 + $0x114] ss:$8 sps:$4 sm:$0xff]   ;;  %v2240_v33 = vld [vmem:[#allocation7 + $0xe0] ss:$8 sps:$4 sm:$0xff]  }
 0x12b   :  { %1185 = vmatpush2.bf16.msra.mxu0 %v2171_v34  ;;  %1226 = vmatpush2.bf16.msra.mxu1 %v2174_v35  ;;  %v2245_v34 = vld [vmem:[#allocation7 + $0xd4] ss:$8 sps:$4 sm:$0xff]   ;;  %v2279_v35 = vld [vmem:[#allocation7 + $0x110] ss:$8 sps:$4 sm:$0xff]  }
 0x12c   :  { %1186 = vmatprep.subr.bf16.mxu0 %v2179_v36  ;;  %1227 = vmatprep.subr.bf16.mxu1 %v2182_v37  ;;  %v2284_v36 = vld [vmem:[#allocation7 + $0x104] ss:$8 sps:$4 sm:$0xff]   ;;  %v2243_v37 = vld [vmem:[#allocation7 + $0xd0] ss:$8 sps:$4 sm:$0xff]  }
 0x12f   :  { %1187 = vmatpush2.bf16.msra.mxu0 %v2177_v38  ;;  %1228 = vmatpush2.bf16.msra.mxu1 %v2180_v39  ;;  %v2248_v38 = vld [vmem:[#allocation7 + $0xc4] ss:$8 sps:$4 sm:$0xff]   ;;  %v2282_v39 = vld [vmem:[#allocation7 + $0x100] ss:$8 sps:$4 sm:$0xff]  }
 0x130   :  { %1188 = vmatprep.subr.bf16.mxu0 %v2185_v40  ;;  %1229 = vmatprep.subr.bf16.mxu1 %v2188_v41  ;;  %v2287_v40 = vld [vmem:[#allocation7 + $0x1f4] ss:$8 sps:$4 sm:$0xff]   ;;  %v2246_v41 = vld [vmem:[#allocation7 + $0xc0] ss:$8 sps:$4 sm:$0xff]  }
 0x133   :  { %1189 = vmatpush2.bf16.msra.mxu0 %v2183_v42  ;;  %1230 = vmatpush2.bf16.msra.mxu1 %v2186_v43  ;;  %v2251_v42 = vld [vmem:[#allocation7 + $0xb4] ss:$8 sps:$4 sm:$0xff]   ;;  %v2285_v43 = vld [vmem:[#allocation7 + $0x1f0] ss:$8 sps:$4 sm:$0xff]  }
 0x134   :  { %1190 = vmatprep.subr.bf16.mxu0 %v2191_v44  ;;  %1231 = vmatprep.subr.bf16.mxu1 %v2194_v45  ;;  %v2290_v44 = vld [vmem:[#allocation7 + $0x1e4] ss:$8 sps:$4 sm:$0xff]   ;;  %v2249_v45 = vld [vmem:[#allocation7 + $0xb0] ss:$8 sps:$4 sm:$0xff]  }
 0x137   :  { %1191 = vmatpush2.bf16.msra.mxu0 %v2189_v46  ;;  %1232 = vmatpush2.bf16.msra.mxu1 %v2192_v47  ;;  %v2254_v46 = vld [vmem:[#allocation7 + $0xa4] ss:$8 sps:$4 sm:$0xff]   ;;  %v2288_v47 = vld [vmem:[#allocation7 + $0x1e0] ss:$8 sps:$4 sm:$0xff]  }
 0x138   :  { %1192 = vmatprep.subr.bf16.mxu0 %v2197_v48  ;;  %1233 = vmatprep.subr.bf16.mxu1 %v2200_v49  ;;  %v2293_v48 = vld [vmem:[#allocation7 + $0x1d4] ss:$8 sps:$4 sm:$0xff]   ;;  %v2252_v49 = vld [vmem:[#allocation7 + $0xa0] ss:$8 sps:$4 sm:$0xff]  }
 0x13b   :  { %1193 = vmatpush2.bf16.msra.mxu0 %v2195_v50  ;;  %1234 = vmatpush2.bf16.msra.mxu1 %v2198_v51  ;;  %v2257_v50 = vld [vmem:[#allocation7 + $0x94] ss:$8 sps:$4 sm:$0xff]   ;;  %v2291_v51 = vld [vmem:[#allocation7 + $0x1d0] ss:$8 sps:$4 sm:$0xff]  }
 0x13c   :  { %1194 = vmatprep.subr.bf16.mxu0 %v2203_v52  ;;  %1235 = vmatprep.subr.bf16.mxu1 %v2206_v53  ;;  %v2296_v52 = vld [vmem:[#allocation7 + $0x1c4] ss:$8 sps:$4 sm:$0xff]   ;;  %v2255_v53 = vld [vmem:[#allocation7 + $0x90] ss:$8 sps:$4 sm:$0xff]  }
 0x13f   :  { %1195 = vmatpush2.bf16.msra.mxu0 %v2201_v54  ;;  %1236 = vmatpush2.bf16.msra.mxu1 %v2204_v55  ;;  %v2260_v54 = vld [vmem:[#allocation7 + $0x84] ss:$8 sps:$4 sm:$0xff]   ;;  %v2294_v55 = vld [vmem:[#allocation7 + $0x1c0] ss:$8 sps:$4 sm:$0xff]  }
 0x140   :  { %1196 = vmatprep.subr.bf16.mxu0 %v2209_v56  ;;  %1237 = vmatprep.subr.bf16.mxu1 %v2212_v59  ;;  %v2299_v56 = vld [vmem:[#allocation7 + $0x1b4] ss:$8 sps:$4 sm:$0xff]   ;;  %v2258_v59 = vld [vmem:[#allocation7 + $0x80] ss:$8 sps:$4 sm:$0xff]  }
 0x143   :  { %1197 = vmatpush2.bf16.msra.mxu0 %v2207_v60  ;;  %1238 = vmatpush2.bf16.msra.mxu1 %v2210_v61  ;;  %v2297_v60 = vld [vmem:[#allocation7 + $0x1b0] ss:$8 sps:$4 sm:$0xff]   ;;  %v2302_v61 = vld [vmem:[#allocation7 + $0x1a4] ss:$8 sps:$4 sm:$0xff]  }
 0x144   :  { %1656 = vmatprep.subr.bf16.mxu0 %v2215_v62  ;;  %1697 = vmatprep.subr.bf16.mxu1 %v2263_v7  ;;  %v2300_v62 = vld [vmem:[#allocation7 + $0x1a0] ss:$8 sps:$4 sm:$0xff]  }
 0x146   :  { %1199 = vmatmul.mubr.bf16.vlgmr.msra.gmra.mxu0 %v2465_v57  ;;  %1240 = vmatmul.mubr.bf16.vlgmr.msra.gmra.mxu1 %v2467_v58  ;;  %v2230_v57 = vld [vmem:[#allocation7 + $0x24] ss:$8 sps:$4 sm:$0xff]  }
 0x147   :  { %1657 = vmatpush1.bf16.msra.mxu0 %v2213_v63  ;;  %v2266_v58 = vld [vmem:[#allocation7 + $0x164] ss:$8 sps:$4 sm:$0xff]   ;;  %1698 = vmatpush1.bf16.msra.mxu1 %v2261_v9  ;;  %v2305_v63 = vld [vmem:[#allocation7 + $0x194] ss:$8 sps:$4 sm:$0xff]  }
 0x148   :  { %1658 = vmatprep.subr.bf16.mxu0 %v2218_v0  ;;  %1699 = vmatprep.subr.bf16.mxu1 %v2266_v58  ;;  %v2303_v0 = vld [vmem:[#allocation7 + $0x190] ss:$8 sps:$4 sm:$0xff]  }
 0x14b   :  { %1659 = vmatpush1.bf16.msra.mxu0 %v2216_v1  ;;  %1700 = vmatpush1.bf16.msra.mxu1 %v2264_v10  ;;  %v2308_v1 = vld [vmem:[#allocation7 + $0x184] ss:$8 sps:$4 sm:$0xff]  }
 0x14c   :  { %1660 = vmatprep.subr.bf16.mxu0 %v2221_v2  ;;  %1701 = vmatprep.subr.bf16.mxu1 %v2269_v11  ;;  %v2306_v2 = vld [vmem:[#allocation7 + $0x180] ss:$8 sps:$4 sm:$0xff]  }
 0x14f   :  { %1661 = vmatpush1.bf16.msra.mxu0 %v2219_v3  ;;  %1702 = vmatpush1.bf16.msra.mxu1 %v2267_v14  ;;  %v422_v3 = vld [vmem:[%s2499_s4] sm:$0xf] }
 0x150   :  { %1662 = vmatprep.subr.bf16.mxu0 %v2224_v4  ;;  %1703 = vmatprep.subr.bf16.mxu1 %v2272_v15  ;;  %v427_v4 = vrot.slane %v422_v3, %v2449_v24 }
 0x153   :  { %1663 = vmatpush1.bf16.msra.mxu0 %v2222_v5  ;;  %1704 = vmatpush1.bf16.msra.mxu1 %v2270_v18  ;;  %v431_v5 = vrot.slane %v422_v3, %v2456_v27 }
 0x154   :  { %1664 = vmatprep.subr.bf16.mxu0 %v2227_v6  ;;  %1705 = vmatprep.subr.bf16.mxu1 %v2275_v19 }
 0x157   :  { %1665 = vmatpush1.bf16.msra.mxu0 %v2225_v8  ;;  %1706 = vmatpush1.bf16.msra.mxu1 %v2273_v22  ;;  %v435_v22 = vrot.slane %v422_v3, %v106_v25 }
 0x158   :  { %1666 = vmatprep.subr.bf16.mxu0 %v2230_v57  ;;  %1707 = vmatprep.subr.bf16.mxu1 %v2278_v26  ;;  %v439_v26 = vrot.slane %v422_v3, %v110_v28 }
 0x15b   :  { %1667 = vmatpush1.bf16.msra.mxu0 %v2228_v12  ;;  %1708 = vmatpush1.bf16.msra.mxu1 %v2276_v31 }
 0x15c   :  { %1668 = vmatprep.subr.bf16.mxu0 %v2233_v13  ;;  %1709 = vmatprep.subr.bf16.mxu1 %v2281_v32 }
 0x15f   :  { %1669 = vmatpush1.bf16.msra.mxu0 %v2231_v16  ;;  %1710 = vmatpush1.bf16.msra.mxu1 %v2279_v35 }
 0x160   :  { %1670 = vmatprep.subr.bf16.mxu0 %v2236_v17  ;;  %1711 = vmatprep.subr.bf16.mxu1 %v2284_v36 }
 0x163   :  { %1671 = vmatpush1.bf16.msra.mxu0 %v2234_v20  ;;  %1712 = vmatpush1.bf16.msra.mxu1 %v2282_v39 }
 0x164   :  { %1672 = vmatprep.subr.bf16.mxu0 %v2239_v21  ;;  %1713 = vmatprep.subr.bf16.mxu1 %v2287_v40 }
 0x167   :  { %1673 = vmatpush2.bf16.msra.mxu0 %v2237_v29  ;;  %1714 = vmatpush2.bf16.msra.mxu1 %v2285_v43 }
 0x168   :  { %1674 = vmatprep.subr.bf16.mxu0 %v2242_v30  ;;  %1715 = vmatprep.subr.bf16.mxu1 %v2290_v44 }
 0x16b   :  { %1675 = vmatpush2.bf16.msra.mxu0 %v2240_v33  ;;  %1716 = vmatpush2.bf16.msra.mxu1 %v2288_v47 }
 0x16c   :  { %1676 = vmatprep.subr.bf16.mxu0 %v2245_v34  ;;  %1717 = vmatprep.subr.bf16.mxu1 %v2293_v48  ;;  %v1324_v48 = vld [vmem:[%s2501_s6] sm:$0x3] }
 0x16f   :  { %1677 = vmatpush2.bf16.msra.mxu0 %v2243_v37  ;;  %1718 = vmatpush2.bf16.msra.mxu1 %v2291_v51 }
 0x170   :  { %1678 = vmatprep.subr.bf16.mxu0 %v2248_v38  ;;  %1719 = vmatprep.subr.bf16.mxu1 %v2296_v52 }
 0x173   :  { %1679 = vmatpush2.bf16.msra.mxu0 %v2246_v41  ;;  %1720 = vmatpush2.bf16.msra.mxu1 %v2294_v55 }
 0x174   :  { %1680 = vmatprep.subr.bf16.mxu0 %v2251_v42  ;;  %1721 = vmatprep.subr.bf16.mxu1 %v2299_v56 }
 0x177   :  { %1681 = vmatpush2.bf16.msra.mxu0 %v2249_v45  ;;  %1722 = vmatpush2.bf16.msra.mxu1 %v2297_v60 }
 0x178   :  { %1682 = vmatprep.subr.bf16.mxu0 %v2254_v46  ;;  %1723 = vmatprep.subr.bf16.mxu1 %v2302_v61 }
 0x17b   :  { %1683 = vmatpush2.bf16.msra.mxu0 %v2252_v49  ;;  %1724 = vmatpush2.bf16.msra.mxu1 %v2300_v62  ;;  %v1329_v49 = vrot.slane %v1324_v48, %v2449_v24 }
 0x17c   :  { %1684 = vmatprep.subr.bf16.mxu0 %v2257_v50  ;;  %1725 = vmatprep.subr.bf16.mxu1 %v2305_v63  ;;  %v1333_v50 = vrot.slane %v1324_v48, %v2456_v27 }
 0x17f   :  { %1685 = vmatpush2.bf16.msra.mxu0 %v2255_v53  ;;  %1726 = vmatpush2.bf16.msra.mxu1 %v2303_v0  ;;  %v1742_v53 = vld [vmem:[%s2502_s7] sm:$0x3] }
 0x180   :  { %1686 = vmatprep.subr.bf16.mxu0 %v2260_v54  ;;  %1727 = vmatprep.subr.bf16.mxu1 %v2308_v1  ;;  %v1747_v61 = vrot.slane %v1742_v53, %v2449_v24  ;;  %v1751_v1 = vrot.slane %v1742_v53, %v2456_v27 }
 0x183   :  { %1687 = vmatpush2.bf16.msra.mxu0 %v2258_v59  ;;  %1728 = vmatpush2.bf16.msra.mxu1 %v2306_v2 }
 0x1c6   :  { %v1118_v6 = vpop.f32.mrf.mxu0  ;;  %v1159_v7 = vpop.f32.mrf.mxu1 }
 0x1c7   :  { %v1119_v8 = vadd.f32 %v1118_v6, %v427_v4 }
 0x1c8   :  { %v1120_v9 = vpop.f32.mrf.mxu0  ;;  %v1161_v57 = vpop.f32.mrf.mxu1 }
 0x1c9   :  { %v1160_v58 = vadd.f32 %v1159_v7, %v1119_v8  ;;  %v1121_v10 = vadd.f32 %v1120_v9, %v431_v5  ;;  %v1988_v9 = vld [vmem:[#allocation2] ss:$0 sm:$0xff] }
 0x1ca   :  { %v1122_v11 = vpop.f32.mrf.mxu0  ;;  %v1163_v12 = vpop.f32.mrf.mxu1 }
 0x1cb   :  { %v1248_v13 = vmul.f32 0.1, %v1160_v58  ;;  %v1162_v14 = vadd.f32 %v1161_v57, %v1121_v10 }
 0x1cc   :  { %v1123_v15 = vpop.f32.mrf.mxu0  ;;  %v1164_v16 = vpop.f32.mrf.mxu1 }
 0x1cd   :  { %v1249_v17 = vmul.f32 0.1, %v1162_v14  ;;  %v1252_v18 = vmax.f32 %v1160_v58, %v1248_v13 }
 0x1cf   :  { %v1253_v19 = vmax.f32 %v1162_v14, %v1249_v17  ;;  %v1256_v21 = vpack.c.bf16 %v1252_v18, %v1252_v18 }
 0x1d1   :  { %v1257_v20 = vpack.c.bf16 %v1253_v19, %v1253_v19 }
 0x1d3   :  { %1688 = vmatprep.mubr.bf16.mxu0 %v1257_v20 }
 0x1d4   :  { %1689 = vmatmul.mubr.bf16.vlgmr.msra.gmra.mxu0 %v1256_v21 }
 0x206   :  { %v1200_v29 = vpop.f32.mrf.mxu0  ;;  %v1241_v30 = vpop.f32.mrf.mxu1 }
 0x207   :  { %v1201_v31 = vadd.f32 %v1200_v29, %v435_v22 }
 0x208   :  { %v1202_v32 = vpop.f32.mrf.mxu0  ;;  %v1243_v33 = vpop.f32.mrf.mxu1 }
 0x209   :  { %v1242_v34 = vadd.f32 %v1241_v30, %v1201_v31  ;;  %v1203_v35 = vadd.f32 %v1202_v32, %v439_v26 }
 0x20a   :  { %v1204_v36 = vpop.f32.mrf.mxu0  ;;  %v1245_v37 = vpop.f32.mrf.mxu1 }
 0x20b   :  { %v1250_v38 = vmul.f32 0.1, %v1242_v34  ;;  %v1244_v39 = vadd.f32 %v1243_v33, %v1203_v35 }
 0x20c   :  { %v1205_v40 = vpop.f32.mrf.mxu0  ;;  %v1246_v41 = vpop.f32.mrf.mxu1 }
 0x20d   :  { %v1251_v42 = vmul.f32 0.1, %v1244_v39  ;;  %v1254_v43 = vmax.f32 %v1242_v34, %v1250_v38 }
 0x20f   :  { %v1255_v44 = vmax.f32 %v1244_v39, %v1251_v42  ;;  %v1258_v45 = vpack.c.bf16 %v1254_v43, %v1254_v43 }
 0x211   :  { %v1259_v25 = vpack.c.bf16 %v1255_v44, %v1255_v44 }
 0x213   :  { %1729 = vmatprep.mubr.bf16.mxu1 %v1259_v25 }
 0x214   :  { %1730 = vmatmul.mubr.bf16.vlgmr.msra.gmra.mxu1 %v1258_v45 }
 0x294   :  { %v1690_v23 = vpop.f32.mrf.mxu0 }
 0x295   :  { %v1691_v51 = vadd.f32 %v1690_v23, %v1329_v49 }
 0x296   :  { %v1692_v28 = vpop.f32.mrf.mxu0 }
 0x297   :  { %v1693_v54 = vadd.f32 %v1692_v28, %v1333_v50 }
 0x298   :  { %v1694_v46 = vpop.f32.mrf.mxu0 }
 0x29a   :  { %v1695_v47 = vpop.f32.mrf.mxu0 }
 0x2d4   :  { %v1731_v52 = vpop.f32.mrf.mxu1 }
 0x2d5   :  { %v1732_v55 = vadd.f32 %v1731_v52, %v1691_v51 }
 0x2d6   :  { %v1733_v56 = vpop.f32.mrf.mxu1 }
 0x2d7   :  { %v1738_v59 = vmul.f32 0.1, %v1732_v55  ;;  %v1734_v60 = vadd.f32 %v1733_v56, %v1693_v54 }
 0x2d8   :  { %v1735_v62 = vpop.f32.mrf.mxu1 }
 0x2d9   :  { %v1740_v63 = vmax.f32 %v1732_v55, %v1738_v59  ;;  %v1739_v0 = vmul.f32 0.1, %v1734_v60 }
 0x2da   :  { %v1736_v2 = vpop.f32.mrf.mxu1 }
 0x2db   :  { %v1741_v3 = vmax.f32 %v1734_v60, %v1739_v0  ;;  %v1754_v4 = vmul.f32 %v1747_v61, %v1740_v63 }
 0x2dd   :  { %v1755_v5 = vmul.f32 %v1751_v1, %v1741_v3  ;;  %v1757_v6 = vsel %vm1756_vm1, %v1754_v4, 0.0 }
 0x2df   :  { %v1758_v7 = vsel %vm1756_vm1, %v1755_v5, 0.0 }
 0x2e0   :  { %v1759_v8 = vadd.f32 %v1758_v7, %v1757_v6 }
 0x2e2   :  { %1760 = vadd.xlane.f32.xlu0 %v1759_v8 }
 0x36b   :  { %v1761_v57 = vpop.xlane.xlu0 %1760 }
 0x36c   :  { %v1769_v58 = vadd.f32 %v1988_v9, %v1761_v57 }
 0x36e   :  { %1771 = vst.msk [vmem:[%s2504_s9] sm:$0x3] %vm1770_vm2, %v1769_v58 }
 0x36f   :  { %1776 = vsyncpa [#allocation4], 1 }
 0x370   :  { %1777 = vsyncpa [#allocation6], 1 }

</bundles_post_ra>
